<compile_context>
chip_gen: v6e
topology: v6e:2x2x1
jax: 0.10.0
libtpu: 0.0.40
codegen_flags: <defaults>
</compile_context>

<pallas_src>
import jax
import jax.numpy as jnp
from jax.experimental import pallas as pl
from jax.experimental.pallas import tpu as pltpu


def _round_up(n, m):
    return ((n + m - 1) // m) * m


def _input_process_kernel(x_ref, emb_ref,
                          w1_ref, b1_ref,
                          w2_ref, b2_ref,
                          w3_ref, b3_ref,
                          w4_ref, b4_ref,
                          o_ref):
    x = x_ref[...]        # (TM, F)  bf16
    emb = emb_ref[...]    # (TM, E)  bf16

    # pose_embedding: Linear -> Sigmoid -> Linear -> Sigmoid
    # (out features of layer 1 padded to 128; padded rows of W2 are zero)
    h1 = jax.nn.sigmoid(
        jnp.dot(x, w1_ref[...], preferred_element_type=jnp.float32) + b1_ref[...])
    h2 = jax.nn.sigmoid(
        jnp.dot(h1.astype(jnp.bfloat16), w2_ref[...],
                preferred_element_type=jnp.float32) + b2_ref[...])

    # combination_extraction on concat((h2, emb), -1): one K=128 MXU push.
    hcat = jnp.concatenate([h2.astype(jnp.bfloat16), emb], axis=-1)   # (TM, 2E)
    h3 = jax.nn.sigmoid(
        jnp.dot(hcat, w3_ref[...], preferred_element_type=jnp.float32) + b3_ref[...])
    out = jax.nn.sigmoid(
        jnp.dot(h3.astype(jnp.bfloat16), w4_ref[...],
                preferred_element_type=jnp.float32) + b4_ref[...])

    o_ref[...] = out.astype(o_ref.dtype)


def _prep_params(params, input_feats, extract_dim):
    """Zero-pad hidden dims to 128-lane-friendly widths; cast weights to bf16."""
    w1, b1, w2, b2, w3, b3, w4, b4 = params
    h_half = extract_dim // 2
    h_mid = int(extract_dim * 1.5)
    p1 = _round_up(h_half, 128)   # padded width of pose_embedding hidden
    p3 = _round_up(h_mid, 128)    # padded width of combination hidden

    # layer 1: pad out-features; layer 2: zero the padded in-rows so the
    # sigmoid(0)=0.5 garbage lanes of h1 contribute nothing.
    w1p = jnp.zeros((input_feats, p1), jnp.float32).at[:, :h_half].set(w1)
    b1p = jnp.zeros((1, p1), jnp.float32).at[:, :h_half].set(b1)
    w2p = jnp.zeros((p1, extract_dim), jnp.float32).at[:h_half, :].set(w2)
    # layer 3: pad out-features; layer 4: zero the padded in-rows.
    w3p = jnp.zeros((2 * extract_dim, p3), jnp.float32).at[:, :h_mid].set(w3)
    b3p = jnp.zeros((1, p3), jnp.float32).at[:, :h_mid].set(b3)
    w4p = jnp.zeros((p3, extract_dim), jnp.float32).at[:h_mid, :].set(w4)

    return (w1p.astype(jnp.bfloat16), b1p,
            w2p.astype(jnp.bfloat16), b2,
            w3p.astype(jnp.bfloat16), b3p,
            w4p.astype(jnp.bfloat16), b4)


def input_process_pallas(x, emb, params, *, tm_max=2048):
    """x: [bs, seq, input_feats], emb: [bs, seq, extract_dim] -> [bs, seq, extract_dim]."""
    bs, seq, input_feats = x.shape
    extract_dim = emb.shape[-1]
    M = bs * seq

    prep = _prep_params(params, input_feats, extract_dim)

    x2 = x.reshape(M, input_feats).astype(jnp.bfloat16)
    e2 = emb.reshape(M, extract_dim).astype(jnp.bfloat16)

    # Row tile: multiple of 8 sublanes, large enough to amortize per-step
    # overhead, capped so the working set stays small and M-independent.
    tm = min(tm_max, _round_up(M, 8))
    mp = _round_up(M, tm)
    if mp != M:
        x2 = jnp.pad(x2, ((0, mp - M), (0, 0)))
        e2 = jnp.pad(e2, ((0, mp - M), (0, 0)))

    grid = (mp // tm,)

    def row_spec(cols):
        return pl.BlockSpec((tm, cols), lambda i: (i, 0))

    def const_spec(a):
        return pl.BlockSpec(a.shape, lambda i: (0,) * a.ndim)

    out = pl.pallas_call(
        _input_process_kernel,
        out_shape=jax.ShapeDtypeStruct((mp, extract_dim), jnp.float32),
        grid=grid,
        in_specs=[row_spec(input_feats), row_spec(extract_dim)]
                 + [const_spec(a) for a in prep],
        out_specs=row_spec(extract_dim),
        compiler_params=pltpu.CompilerParams(
            dimension_semantics=("parallel",),
            vmem_limit_bytes=32 * 1024 * 1024),
    )(x2, e2, *prep)

    return out[:M].reshape(bs, seq, extract_dim)


def init_params(key, input_feats, extract_dim):
    """Deterministic parameter init matching the PyTorch module's shapes.

    Linear weights stored transposed: (in_features, out_features); biases (1, out).
    """
    h_half = extract_dim // 2
    h_mid = int(extract_dim * 1.5)
    ks = jax.random.split(key, 8)

    def lin(kw, kb, fan_in, fan_out):
        bound = 1.0 / jnp.sqrt(fan_in)
        w = jax.random.uniform(kw, (fan_in, fan_out), jnp.float32, -bound, bound)
        b = jax.random.uniform(kb, (1, fan_out), jnp.float32, -bound, bound)
        return w, b

    w1, b1 = lin(ks[0], ks[1], input_feats, h_half)          # pose_embedding[0]
    w2, b2 = lin(ks[2], ks[3], h_half, extract_dim)           # pose_embedding[2]
    w3, b3 = lin(ks[4], ks[5], extract_dim * 2, h_mid)        # combination_extraction[0]
    w4, b4 = lin(ks[6], ks[7], h_mid, extract_dim)            # combination_extraction[2]
    return (w1, b1, w2, b2, w3, b3, w4, b4)


def _reference(x, emb, params):
    (w1, b1, w2, b2, w3, b3, w4, b4) = params
    h = jax.nn.sigmoid(x.astype(jnp.float32) @ w1 + b1)
    h = jax.nn.sigmoid(h @ w2 + b2)
    h = jnp.concatenate([h, emb.astype(jnp.float32)], axis=-1)
    h = jax.nn.sigmoid(h @ w3 + b3)
    h = jax.nn.sigmoid(h @ w4 + b4)
    return h


if __name__ == "__main__":
    # data_rep = 'xyz' branch
    bs, seq = 2, 8
    input_feats = 32
    extract_dim = 64

    key = jax.random.PRNGKey(0)
    kx, ke, kp = jax.random.split(key, 3)

    x = jax.random.normal(kx, (bs, seq, input_feats), jnp.float32)
    emb = jax.random.normal(ke, (bs, seq, extract_dim), jnp.float32)
    params = init_params(kp, input_feats, extract_dim)

    out = input_process_pallas(x, emb, params)
    out = jax.block_until_ready(out)

    ref = _reference(x, emb, params)
    assert out.shape == (bs, seq, extract_dim)
    # bf16 MXU operands with f32 accumulation => relaxed tolerance vs pure-f32 ref.
    assert jnp.allclose(out, ref, atol=2e-2, rtol=2e-2), float(
        jnp.max(jnp.abs(out - ref)))

    # TODO(synk): 'rot_vel' branch raises in the reference module (undeveloped) — not implemented.
    print("KERNEL_OK")
</pallas_src>

<mosaic_0001>
module attributes {stable_mosaic.version = 11 : i64} {
  func.func @_input_process_kernel(%arg0: i32, %arg1: memref<16x32xbf16, #tpu.memory_space<vmem>>, %arg2: memref<16x64xbf16, #tpu.memory_space<vmem>>, %arg3: memref<32x128xbf16, #tpu.memory_space<vmem>>, %arg4: memref<1x128xf32, #tpu.memory_space<vmem>>, %arg5: memref<128x64xbf16, #tpu.memory_space<vmem>>, %arg6: memref<1x64xf32, #tpu.memory_space<vmem>>, %arg7: memref<128x128xbf16, #tpu.memory_space<vmem>>, %arg8: memref<1x128xf32, #tpu.memory_space<vmem>>, %arg9: memref<128x64xbf16, #tpu.memory_space<vmem>>, %arg10: memref<1x64xf32, #tpu.memory_space<vmem>>, %arg11: memref<16x64xf32, #tpu.memory_space<vmem>>) attributes {dimension_semantics = [#tpu.dimension_semantics<parallel>], iteration_bounds = array<i64: 1>, scalar_prefetch = 0 : i64, scratch_operands = 0 : i64, tpu.core_type = #tpu.core_type<tc>, window_params = [{transform_indices = @transform_0, window_bounds = array<i64: 16, 32>}, {transform_indices = @transform_1, window_bounds = array<i64: 16, 64>}, {pipeline_mode = #tpu.pipeline_mode<synchronous>, transform_indices = @transform_2, window_bounds = array<i64: 32, 128>}, {pipeline_mode = #tpu.pipeline_mode<synchronous>, transform_indices = @transform_3, window_bounds = array<i64: 1, 128>}, {pipeline_mode = #tpu.pipeline_mode<synchronous>, transform_indices = @transform_4, window_bounds = array<i64: 128, 64>}, {pipeline_mode = #tpu.pipeline_mode<synchronous>, transform_indices = @transform_5, window_bounds = array<i64: 1, 64>}, {pipeline_mode = #tpu.pipeline_mode<synchronous>, transform_indices = @transform_6, window_bounds = array<i64: 128, 128>}, {pipeline_mode = #tpu.pipeline_mode<synchronous>, transform_indices = @transform_7, window_bounds = array<i64: 1, 128>}, {pipeline_mode = #tpu.pipeline_mode<synchronous>, transform_indices = @transform_8, window_bounds = array<i64: 128, 64>}, {pipeline_mode = #tpu.pipeline_mode<synchronous>, transform_indices = @transform_9, window_bounds = array<i64: 1, 64>}, {transform_indices = @transform_10, window_bounds = array<i64: 16, 64>}]} {
    %c0 = arith.constant 0 : index
    %c0_0 = arith.constant 0 : index
    %0 = vector.load %arg1[%c0, %c0_0] : memref<16x32xbf16, #tpu.memory_space<vmem>>, vector<16x32xbf16>
    %c0_1 = arith.constant 0 : index
    %c0_2 = arith.constant 0 : index
    %1 = vector.load %arg2[%c0_1, %c0_2] : memref<16x64xbf16, #tpu.memory_space<vmem>>, vector<16x64xbf16>
    %c0_3 = arith.constant 0 : index
    %c0_4 = arith.constant 0 : index
    %2 = vector.load %arg3[%c0_3, %c0_4] : memref<32x128xbf16, #tpu.memory_space<vmem>>, vector<32x128xbf16>
    %cst = arith.constant dense<0.000000e+00> : vector<16x128xf32>
    %3 = tpu.matmul %0, %2, %cst {dimension_numbers = #tpu.dot_dimension_numbers<[1], [0], [0], [1], [0, 0, 1, 1], [], []>} : vector<16x32xbf16>, vector<32x128xbf16>, vector<16x128xf32> -> vector<16x128xf32>
    %c0_5 = arith.constant 0 : index
    %c0_6 = arith.constant 0 : index
    %4 = vector.load %arg4[%c0_5, %c0_6] : memref<1x128xf32, #tpu.memory_space<vmem>>, vector<1x128xf32>
    %5 = vector.broadcast %4 : vector<1x128xf32> to vector<16x128xf32>
    %6 = arith.addf %3, %5 : vector<16x128xf32>
    %7 = arith.negf %6 : vector<16x128xf32>
    %8 = math.exp %7 : vector<16x128xf32>
    %cst_7 = arith.constant 1.000000e+00 : f32
    %9 = vector.broadcast %cst_7 : f32 to vector<16x128xf32>
    %10 = arith.addf %9, %8 : vector<16x128xf32>
    %11 = arith.divf %9, %10 : vector<16x128xf32>
    %12 = arith.truncf %11 : vector<16x128xf32> to vector<16x128xbf16>
    %c0_8 = arith.constant 0 : index
    %c0_9 = arith.constant 0 : index
    %13 = vector.load %arg5[%c0_8, %c0_9] : memref<128x64xbf16, #tpu.memory_space<vmem>>, vector<128x64xbf16>
    %cst_10 = arith.constant dense<0.000000e+00> : vector<16x64xf32>
    %14 = tpu.matmul %12, %13, %cst_10 {dimension_numbers = #tpu.dot_dimension_numbers<[1], [0], [0], [1], [0, 0, 1, 1], [], []>} : vector<16x128xbf16>, vector<128x64xbf16>, vector<16x64xf32> -> vector<16x64xf32>
    %c0_11 = arith.constant 0 : index
    %c0_12 = arith.constant 0 : index
    %15 = vector.load %arg6[%c0_11, %c0_12] : memref<1x64xf32, #tpu.memory_space<vmem>>, vector<1x64xf32>
    %16 = vector.broadcast %15 : vector<1x64xf32> to vector<16x64xf32>
    %17 = arith.addf %14, %16 : vector<16x64xf32>
    %18 = arith.negf %17 : vector<16x64xf32>
    %19 = math.exp %18 : vector<16x64xf32>
    %cst_13 = arith.constant 1.000000e+00 : f32
    %20 = vector.broadcast %cst_13 : f32 to vector<16x64xf32>
    %21 = arith.addf %20, %19 : vector<16x64xf32>
    %22 = arith.divf %20, %21 : vector<16x64xf32>
    %23 = arith.truncf %22 : vector<16x64xf32> to vector<16x64xbf16>
    %24 = tpu.concatenate %23, %1 in 1 : vector<16x64xbf16>, vector<16x64xbf16> -> vector<16x128xbf16>
    %c0_14 = arith.constant 0 : index
    %c0_15 = arith.constant 0 : index
    %25 = vector.load %arg7[%c0_14, %c0_15] : memref<128x128xbf16, #tpu.memory_space<vmem>>, vector<128x128xbf16>
    %cst_16 = arith.constant dense<0.000000e+00> : vector<16x128xf32>
    %26 = tpu.matmul %24, %25, %cst_16 {dimension_numbers = #tpu.dot_dimension_numbers<[1], [0], [0], [1], [0, 0, 1, 1], [], []>} : vector<16x128xbf16>, vector<128x128xbf16>, vector<16x128xf32> -> vector<16x128xf32>
    %c0_17 = arith.constant 0 : index
    %c0_18 = arith.constant 0 : index
    %27 = vector.load %arg8[%c0_17, %c0_18] : memref<1x128xf32, #tpu.memory_space<vmem>>, vector<1x128xf32>
    %28 = vector.broadcast %27 : vector<1x128xf32> to vector<16x128xf32>
    %29 = arith.addf %26, %28 : vector<16x128xf32>
    %30 = arith.negf %29 : vector<16x128xf32>
    %31 = math.exp %30 : vector<16x128xf32>
    %cst_19 = arith.constant 1.000000e+00 : f32
    %32 = vector.broadcast %cst_19 : f32 to vector<16x128xf32>
    %33 = arith.addf %32, %31 : vector<16x128xf32>
    %34 = arith.divf %32, %33 : vector<16x128xf32>
    %35 = arith.truncf %34 : vector<16x128xf32> to vector<16x128xbf16>
    %c0_20 = arith.constant 0 : index
    %c0_21 = arith.constant 0 : index
    %36 = vector.load %arg9[%c0_20, %c0_21] : memref<128x64xbf16, #tpu.memory_space<vmem>>, vector<128x64xbf16>
    %cst_22 = arith.constant dense<0.000000e+00> : vector<16x64xf32>
    %37 = tpu.matmul %35, %36, %cst_22 {dimension_numbers = #tpu.dot_dimension_numbers<[1], [0], [0], [1], [0, 0, 1, 1], [], []>} : vector<16x128xbf16>, vector<128x64xbf16>, vector<16x64xf32> -> vector<16x64xf32>
    %c0_23 = arith.constant 0 : index
    %c0_24 = arith.constant 0 : index
    %38 = vector.load %arg10[%c0_23, %c0_24] : memref<1x64xf32, #tpu.memory_space<vmem>>, vector<1x64xf32>
    %39 = vector.broadcast %38 : vector<1x64xf32> to vector<16x64xf32>
    %40 = arith.addf %37, %39 : vector<16x64xf32>
    %41 = arith.negf %40 : vector<16x64xf32>
    %42 = math.exp %41 : vector<16x64xf32>
    %cst_25 = arith.constant 1.000000e+00 : f32
    %43 = vector.broadcast %cst_25 : f32 to vector<16x64xf32>
    %44 = arith.addf %43, %42 : vector<16x64xf32>
    %45 = arith.divf %43, %44 : vector<16x64xf32>
    %c0_26 = arith.constant 0 : index
    %c0_27 = arith.constant 0 : index
    %46 = vector.load %arg11[%c0_26, %c0_27] : memref<16x64xf32, #tpu.memory_space<vmem>>, vector<16x64xf32>
    tpu.vector_store %arg11[%c0_26, %c0_27], %45 {strides = array<i32>} : memref<16x64xf32, #tpu.memory_space<vmem>>, vector<16x64xf32>,
    return
  }
  func.func @transform_0(%arg0: i32) -> (i32, i32) {
    %c0_i32 = arith.constant 0 : i32
    %c0_i32_0 = arith.constant 0 : i32
    return %arg0, %c0_i32 : i32, i32
  }
  func.func @transform_1(%arg0: i32) -> (i32, i32) {
    %c0_i32 = arith.constant 0 : i32
    %c0_i32_0 = arith.constant 0 : i32
    return %arg0, %c0_i32 : i32, i32
  }
  func.func @transform_2(%arg0: i32) -> (i32, i32) {
    %c0_i32 = arith.constant 0 : i32
    %c0_i32_0 = arith.constant 0 : i32
    %c0_i32_1 = arith.constant 0 : i32
    return %c0_i32, %c0_i32_0 : i32, i32
  }
  func.func @transform_3(%arg0: i32) -> (i32, i32) {
    %c0_i32 = arith.constant 0 : i32
    %c0_i32_0 = arith.constant 0 : i32
    %c0_i32_1 = arith.constant 0 : i32
    return %c0_i32, %c0_i32_0 : i32, i32
  }
  func.func @transform_4(%arg0: i32) -> (i32, i32) {
    %c0_i32 = arith.constant 0 : i32
    %c0_i32_0 = arith.constant 0 : i32
    %c0_i32_1 = arith.constant 0 : i32
    return %c0_i32, %c0_i32_0 : i32, i32
  }
  func.func @transform_5(%arg0: i32) -> (i32, i32) {
    %c0_i32 = arith.constant 0 : i32
    %c0_i32_0 = arith.constant 0 : i32
    %c0_i32_1 = arith.constant 0 : i32
    return %c0_i32, %c0_i32_0 : i32, i32
  }
  func.func @transform_6(%arg0: i32) -> (i32, i32) {
    %c0_i32 = arith.constant 0 : i32
    %c0_i32_0 = arith.constant 0 : i32
    %c0_i32_1 = arith.constant 0 : i32
    return %c0_i32, %c0_i32_0 : i32, i32
  }
  func.func @transform_7(%arg0: i32) -> (i32, i32) {
    %c0_i32 = arith.constant 0 : i32
    %c0_i32_0 = arith.constant 0 : i32
    %c0_i32_1 = arith.constant 0 : i32
    return %c0_i32, %c0_i32_0 : i32, i32
  }
  func.func @transform_8(%arg0: i32) -> (i32, i32) {
    %c0_i32 = arith.constant 0 : i32
    %c0_i32_0 = arith.constant 0 : i32
    %c0_i32_1 = arith.constant 0 : i32
    return %c0_i32, %c0_i32_0 : i32, i32
  }
  func.func @transform_9(%arg0: i32) -> (i32, i32) {
    %c0_i32 = arith.constant 0 : i32
    %c0_i32_0 = arith.constant 0 : i32
    %c0_i32_1 = arith.constant 0 : i32
    return %c0_i32, %c0_i32_0 : i32, i32
  }
  func.func @transform_10(%arg0: i32) -> (i32, i32) {
    %c0_i32 = arith.constant 0 : i32
    %c0_i32_0 = arith.constant 0 : i32
    return %arg0, %c0_i32 : i32, i32
  }
}

</mosaic_0001>

<bundles_post_ra>
// kernel: tpu_custom_call.1
= control target key start
LH: loop header
LB: loop body
LE: loop exit
PB: predicated region body
PF: predicated region fallthrough
CT: control target
= control target key end

     0   :  { %v758_v1 = vmov 0.0   ;;  %vm759_vm0 = vmmov 0   ;;  %vm69_vm1 = vcmask 261120   ;;  %s955_s0 = inlined_call_operand.vmem [shape: bf16[16,32], index: 0, kind: input, shape index: {}]   ;;  %s956_s1 = inlined_call_operand.vmem [shape: bf16[16,64], index: 1, kind: input, shape index: {}]   ;;  %s957_s2 = inlined_call_operand.vmem [shape: bf16[32,128], index: 2, kind: input, shape index: {}]   ;;  %s958_s3 = inlined_call_operand.vmem [shape: f32[1,128], index: 3, kind: input, shape index: {}]   ;;  %s959_s4 = inlined_call_operand.vmem [shape: bf16[128,64], index: 4, kind: input, shape index: {}]   ;;  %s960_s5 = inlined_call_operand.vmem [shape: f32[1,64], index: 5, kind: input, shape index: {}]   ;;  %s961_s6 = inlined_call_operand.vmem [shape: bf16[128,128], index: 6, kind: input, shape index: {}]   ;;  %s962_s7 = inlined_call_operand.vmem [shape: f32[1,128], index: 7, kind: input, shape index: {}]   ;;  %s963_s8 = inlined_call_operand.vmem [shape: bf16[128,64], index: 8, kind: input, shape index: {}]   ;;  %s964_s9 = inlined_call_operand.vmem [shape: f32[1,64], index: 9, kind: input, shape index: {}]   ;;  %s965_s10 = inlined_call_operand.hbm [shape: f32[16,64], index: 10, kind: output, shape index: {}]  }
   0x1   :  { %v676_v0 = vld [vmem:[%s957_s2 + $0x8] sm:$0xff]   ;;  %602 = vmatprep.subr.bf16.mxu0 %v758_v1  ;;  %610 = vmatprep.subr.bf16.mxu1 %v758_v1  ;;  %v677_v2 = vld [vmem:[%s957_s2] sm:$0xff]  }
   0x2   :  { %603 = vmatpush3.bf16.msra.mxu0 %v676_v0  ;;  %606 = vmatprep.mubr.msk.bf16.mxu0 %vm759_vm0, %v758_v1  ;;  %v678_v3 = vld [vmem:[%s955_s0] sm:$0xff]  }
   0x3   :  { %604 = vmatprep.subr.bf16.mxu0 %v758_v1  ;;  %626 = vmatprep.mubr.msk.bf16.mxu1 %vm759_vm0, %v758_v1 }
   0x6   :  { %605 = vmatpush3.bf16.msra.mxu0 %v677_v2 }
   0x7   :  { %630 = vmatprep.subr.bf16.mxu0 %v758_v1 }
   0x9   :  { %607 = vmatmul.mubr.msk.bf16.vlgmr.msra.gmra.mxu0 %vm69_vm1, %v678_v3 }
   0xa   :  { %646 = vmatprep.mubr.msk.bf16.mxu0 %vm759_vm0, %v758_v1 }
   0xb   :  { %15 = vsyncpa [#allocation3], 0  ;;  %v679_v4 = vld [vmem:[%s959_s4 + $0x38] sm:$0xff]   ;;  %v680_v5 = vld [vmem:[%s959_s4 + $0x30] sm:$0xff]   ;;  %s760_s15 = smov 64   ;;  %vm259_vm2 = vcmask 523264  }
   0xc   :  { %611 = vmatpush3.bf16.msra.mxu1 %v679_v4  ;;  %v681_v6 = vld [vmem:[%s959_s4 + $0x28] sm:$0xff]   ;;  %v682_v7 = vld [vmem:[%s959_s4 + $0x20] sm:$0xff]   ;;  %v683_v8 = vld [vmem:[%s959_s4 + $0x18] sm:$0xff]   ;;  %s761_s22 = smov [#allocation2]  }
   0xd   :  { %612 = vmatprep.subr.bf16.mxu1 %v758_v1  ;;  %v684_v9 = vld [vmem:[%s959_s4 + $0x10] sm:$0xff]   ;;  %v685_v10 = vld [vmem:[%s959_s4 + $0x8] sm:$0xff]   ;;  %v686_v11 = vld [vmem:[%s959_s4] sm:$0xff]   ;;  %s520_s23 = sshll.u32 %s761_s22, 4  ;;  %s521_s23 = int_to_ptr.vmem [resolvable:$true] %s520_s23 }
   0xe   :  { %v687_v12 = vld [vmem:[%s956_s1] sm:$0xff]   ;;  %v688_v29 = vld [vmem:[%s961_s6 + $0x38] sm:$0xff]   ;;  %v689_v30 = vld [vmem:[%s961_s6 + $0x30] sm:$0xff]   ;;  %p741_p1 = scmp.lt.s32.totalorder %s521_s23, %s521_s23 }
   0xf   :  { %257 = vrot.lane.b32.xlu0 %v687_v12, %s760_s15  ;;  %v531_v13 = vld [vmem:[%s958_s3] ss:$0 sm:$0xff]  ;;  %631 = vmatpush3.bf16.msra.mxu0 %v688_v29  ;;  %v690_v31 = vld [vmem:[%s961_s6 + $0x28] sm:$0xff]   ;;  %v692_v33 = vld [vmem:[%s961_s6 + $0x18] sm:$0xff]  }
  0x10   :  { %613 = vmatpush3.bf16.msra.mxu1 %v680_v5  ;;  %632 = vmatprep.subr.bf16.mxu0 %v758_v1  ;;  %v691_v32 = vld [vmem:[%s961_s6 + $0x20] sm:$0xff]   ;;  %v693_v34 = vld [vmem:[%s961_s6 + $0x10] sm:$0xff]   ;;  %v694_v35 = vld [vmem:[%s961_s6 + $0x8] sm:$0xff]  }
  0x11   :  { %614 = vmatprep.subr.bf16.mxu1 %v758_v1  ;;  %v695_v36 = vld [vmem:[%s961_s6] sm:$0xff]   ;;  %v696_v55 = vld [vmem:[%s963_s8 + $0x38] sm:$0xff]   ;;  %v697_v56 = vld [vmem:[%s963_s8 + $0x30] sm:$0xff]  }
  0x12   :  { %v538_v37 = vld [vmem:[%s960_s5] ss:$0 sm:$0xff]  ;;  %v698_v57 = vld [vmem:[%s963_s8 + $0x28] sm:$0xff]   ;;  %v700_v59 = vld [vmem:[%s963_s8 + $0x18] sm:$0xff]  }
  0x13   :  { %633 = vmatpush3.bf16.msra.mxu0 %v689_v30  ;;  %v699_v58 = vld [vmem:[%s963_s8 + $0x20] sm:$0xff]   ;;  %v701_v60 = vld [vmem:[%s963_s8 + $0x10] sm:$0xff]   ;;  %v702_v61 = vld [vmem:[%s963_s8 + $0x8] sm:$0xff]  }
  0x14   :  { %615 = vmatpush3.bf16.msra.mxu1 %v681_v6  ;;  %634 = vmatprep.subr.bf16.mxu0 %v758_v1  ;;  %v703_v62 = vld [vmem:[%s963_s8] sm:$0xff]  }
  0x15   :  { %616 = vmatprep.subr.bf16.mxu1 %v758_v1  ;;  %v550_v63 = vld [vmem:[%s962_s7] ss:$0 sm:$0xff] }
  0x17   :  { %635 = vmatpush3.bf16.msra.mxu0 %v690_v31 }
  0x18   :  { %617 = vmatpush3.bf16.msra.mxu1 %v682_v7  ;;  %636 = vmatprep.subr.bf16.mxu0 %v758_v1 }
  0x19   :  { %618 = vmatprep.subr.bf16.mxu1 %v758_v1 }
  0x1b   :  { %637 = vmatpush3.bf16.msra.mxu0 %v691_v32 }
  0x1c   :  { %619 = vmatpush3.bf16.msra.mxu1 %v683_v8  ;;  %638 = vmatprep.subr.bf16.mxu0 %v758_v1 }
  0x1d   :  { %620 = vmatprep.subr.bf16.mxu1 %v758_v1 }
  0x1f   :  { %639 = vmatpush3.bf16.msra.mxu0 %v692_v33 }
  0x20   :  { %621 = vmatpush3.bf16.msra.mxu1 %v684_v9  ;;  %640 = vmatprep.subr.bf16.mxu0 %v758_v1 }
  0x21   :  { %622 = vmatprep.subr.bf16.mxu1 %v758_v1 }
  0x23   :  { %641 = vmatpush3.bf16.msra.mxu0 %v693_v34 }
  0x24   :  { %623 = vmatpush3.bf16.msra.mxu1 %v685_v10  ;;  %642 = vmatprep.subr.bf16.mxu0 %v758_v1 }
  0x25   :  { %624 = vmatprep.subr.bf16.mxu1 %v758_v1 }
  0x27   :  { %643 = vmatpush3.bf16.msra.mxu0 %v694_v35 }
  0x28   :  { %625 = vmatpush3.bf16.msra.mxu1 %v686_v11  ;;  %644 = vmatprep.subr.bf16.mxu0 %v758_v1 }
  0x29   :  { %650 = vmatprep.subr.bf16.mxu1 %v758_v1 }
  0x2b   :  { %645 = vmatpush3.bf16.msra.mxu0 %v695_v36 }
  0x81   :  { %v258_v52 = vpop.permute.xlu0 %257 }
  0xc9   :  { %v107_v14 = vpop.f32.mrf.mxu0 }
  0xca   :  { %v108_v15 = vadd.f32 %v531_v13, %v107_v14 }
  0xcb   :  { %v608_v16 = vpop.f32.mrf.mxu0 }
  0xcc   :  { %v536_v17 = vmul.f32 -1.442695, %v108_v15  ;;  %v561_v15 = vld [vmem:[%s964_s9] ss:$0 sm:$0xff]  ;;  %s736_s9 = scalar_lea.vmem %s521_s23, 256 }
  0xcd   :  { %v110_v18 = vpop.f32.mrf.mxu0  ;;  %p737_p0 = scmp.ne.s32.totalorder %s521_s23, %s736_s9  ;;  %p742_p2 = scmp.lt.s32.totalorder %s736_s9, %s736_s9 }
  0xce   :  { %704 = vpow2.f32 %v536_v17  ;;  %v111_v19 = vadd.f32 %v531_v13, %v110_v18 }
  0xcf   :  { %v609_v20 = vpop.f32.mrf.mxu0  ;;  %p743_p3 = por %p742_p2, %p741_p1 }
  0xd0   :  { %v537_v21 = vmul.f32 -1.442695, %v111_v19 }
  0xd1   :  { %p744_p4 = pnand %p743_p3, %p737_p0 }
  0xd2   :  { %706 = vpow2.f32 %v537_v21 }
  0xdb   :  { %v705_v22 = vpop.eup %704 }
  0xdc   :  { %v120_v23 = vadd.f32 1.0, %v705_v22 }
  0xde   :  { %708 = vrcp.f32 %v120_v23 }
  0xdf   :  { %v707_v24 = vpop.eup %706 }
  0xe0   :  { %v121_v25 = vadd.f32 1.0, %v707_v24 }
  0xe2   :  { %710 = vrcp.f32 %v121_v25 }
  0xeb   :  { %v709_v26 = vpop.eup %708 }
  0xef   :  { %v711_v27 = vpop.eup %710 }
  0xf0   :  { %v126_v28 = vpack.c.bf16 %v711_v27, %v709_v26 }
  0xf2   :  { %627 = vmatmul.mubr.bf16.vlgmr.msra.gmra.mxu1 %v126_v28 }
  0xf3   :  { %666 = vmatprep.mubr.msk.bf16.mxu1 %vm759_vm0, %v758_v1  ;;  %651 = vmatpush3.bf16.msra.mxu1 %v696_v55 }
  0xf4   :  { %652 = vmatprep.subr.bf16.mxu1 %v758_v1 }
  0xf7   :  { %653 = vmatpush3.bf16.msra.mxu1 %v697_v56 }
  0xf8   :  { %654 = vmatprep.subr.bf16.mxu1 %v758_v1 }
  0xfb   :  { %655 = vmatpush3.bf16.msra.mxu1 %v698_v57 }
  0xfc   :  { %656 = vmatprep.subr.bf16.mxu1 %v758_v1 }
  0xff   :  { %657 = vmatpush3.bf16.msra.mxu1 %v699_v58 }
 0x100   :  { %658 = vmatprep.subr.bf16.mxu1 %v758_v1 }
 0x103   :  { %659 = vmatpush3.bf16.msra.mxu1 %v700_v59 }
 0x104   :  { %660 = vmatprep.subr.bf16.mxu1 %v758_v1 }
 0x107   :  { %661 = vmatpush3.bf16.msra.mxu1 %v701_v60 }
 0x108   :  { %662 = vmatprep.subr.bf16.mxu1 %v758_v1 }
 0x10b   :  { %663 = vmatpush3.bf16.msra.mxu1 %v702_v61 }
 0x10c   :  { %664 = vmatprep.subr.bf16.mxu1 %v758_v1 }
 0x10f   :  { %665 = vmatpush3.bf16.msra.mxu1 %v703_v62 }
 0x1b2   :  { %v232_v38 = vpop.f32.mrf.mxu1 }
 0x1b3   :  { %v233_v39 = vadd.f32 %v538_v37, %v232_v38 }
 0x1b4   :  { %v628_v40 = vpop.f32.mrf.mxu1 }
 0x1b5   :  { %v547_v41 = vmul.f32 -1.442695, %v233_v39 }
 0x1b6   :  { %v235_v42 = vpop.f32.mrf.mxu1 }
 0x1b7   :  { %712 = vpow2.f32 %v547_v41  ;;  %v236_v43 = vadd.f32 %v538_v37, %v235_v42 }
 0x1b8   :  { %v629_v44 = vpop.f32.mrf.mxu1 }
 0x1b9   :  { %v548_v45 = vmul.f32 -1.442695, %v236_v43 }
 0x1bb   :  { %714 = vpow2.f32 %v548_v45 }
 0x1c4   :  { %v713_v46 = vpop.eup %712 }
 0x1c5   :  { %v245_v47 = vadd.f32 1.0, %v713_v46 }
 0x1c7   :  { %716 = vrcp.f32 %v245_v47 }
 0x1c8   :  { %v715_v48 = vpop.eup %714 }
 0x1c9   :  { %v246_v49 = vadd.f32 1.0, %v715_v48 }
 0x1cb   :  { %718 = vrcp.f32 %v246_v49 }
 0x1d4   :  { %v717_v50 = vpop.eup %716 }
 0x1d8   :  { %v719_v51 = vpop.eup %718 }
 0x1d9   :  { %v251_v53 = vpack.c.bf16 %v719_v51, %v717_v50 }
 0x1db   :  { %v262_v54 = vsel %vm259_vm2, %v251_v53, %v258_v52 }
 0x1dc   :  { %647 = vmatmul.mubr.bf16.vlgmr.msra.gmra.mxu0 %v262_v54 }
 0x29c   :  { %v369_v0 = vpop.f32.mrf.mxu0 }
 0x29d   :  { %v370_v2 = vadd.f32 %v550_v63, %v369_v0 }
 0x29e   :  { %v648_v3 = vpop.f32.mrf.mxu0 }
 0x29f   :  { %v559_v4 = vmul.f32 -1.442695, %v370_v2 }
 0x2a0   :  { %v372_v5 = vpop.f32.mrf.mxu0 }
 0x2a1   :  { %720 = vpow2.f32 %v559_v4  ;;  %v373_v6 = vadd.f32 %v550_v63, %v372_v5 }
 0x2a2   :  { %v649_v7 = vpop.f32.mrf.mxu0 }
 0x2a3   :  { %v560_v8 = vmul.f32 -1.442695, %v373_v6 }
 0x2a5   :  { %722 = vpow2.f32 %v560_v8 }
 0x2ae   :  { %v721_v9 = vpop.eup %720 }
 0x2af   :  { %v382_v10 = vadd.f32 1.0, %v721_v9 }
 0x2b1   :  { %724 = vrcp.f32 %v382_v10 }
 0x2b2   :  { %v723_v11 = vpop.eup %722 }
 0x2b3   :  { %v383_v12 = vadd.f32 1.0, %v723_v11 }
 0x2b5   :  { %726 = vrcp.f32 %v383_v12 }
 0x2be   :  { %v725_v1 = vpop.eup %724 }
 0x2c2   :  { %v727_v13 = vpop.eup %726 }
 0x2c3   :  { %v388_v14 = vpack.c.bf16 %v727_v13, %v725_v1 }
 0x2c5   :  { %667 = vmatmul.mubr.bf16.vlgmr.msra.gmra.mxu1 %v388_v14 }
 0x385   :  { %v494_v16 = vpop.f32.mrf.mxu1 }
 0x386   :  { %v495_v17 = vadd.f32 %v561_v15, %v494_v16 }
 0x387   :  { %v668_v18 = vpop.f32.mrf.mxu1 }
 0x388   :  { %v570_v19 = vmul.f32 -1.442695, %v495_v17 }
 0x389   :  { %v497_v20 = vpop.f32.mrf.mxu1 }
 0x38a   :  { %728 = vpow2.f32 %v570_v19  ;;  %v498_v21 = vadd.f32 %v561_v15, %v497_v20 }
 0x38b   :  { %v669_v22 = vpop.f32.mrf.mxu1 }
 0x38c   :  { %v571_v23 = vmul.f32 -1.442695, %v498_v21 }
 0x38e   :  { %730 = vpow2.f32 %v571_v23 }
 0x397   :  { %v729_v24 = vpop.eup %728 }
 0x398   :  { %v507_v25 = vadd.f32 1.0, %v729_v24 }
 0x39a   :  { %732 = vrcp.f32 %v507_v25 }
 0x39b   :  { %v731_v26 = vpop.eup %730 }
 0x39c   :  { %v508_v27 = vadd.f32 1.0, %v731_v26 }
 0x39e   :  { %734 = vrcp.f32 %v508_v27 }
 0x3a7   :  { %v733_v28 = vpop.eup %732 }
 0x3a8   :  { %513 = vst.msk [vmem:[#allocation2] sm:$0xff] %vm259_vm2, %v733_v28 }
 0x3ab   :  { %v735_v29 = vpop.eup %734 }
 0x3ac   :  { %514 = vst.msk [vmem:[#allocation2 + $0x8] sm:$0xff] %vm259_vm2, %v735_v29 }
 0x3ad   :  { %747 = shalt.err (!%p744_p4)
}
 0x3ae   :  { %s762_s24 = smov 128   ;;  %s763_s25 = smov 8  }
 0x3af   :  { %526 = dma.vmem_to_hbm [thread:$0]  %s521_s23, 256, %s965_s10, [#allocation3], %s762_s24, %s762_s24, %s763_s25  }
 0x3b0   :  { %756 = dma.done.wait [#allocation3], 256  }
 0x3b1   :  { %757 = vsyncadd [#allocation3], 4294967040 }
 0x3b2   :  { %530 = vsyncpa [#allocation3], 1 }

</bundles_post_ra>
